<compile_context>
chip_gen: v7x
topology: tpu7x:2x2x1
jax: 0.10.0
libtpu: 0.0.40
codegen_flags: <defaults>
</compile_context>

<pallas_src>
import jax
import jax.numpy as jnp
from jax.experimental import pallas as pl
from jax.experimental.pallas import tpu as pltpu

HEAD_LANES = 128  # lane-padded width of the fused [mu | logvar] output slab


def _vae_kernel(x_ref, eps_ref,
                we1_ref, be1_ref,
                whead_ref, bhead_ref,
                wd1_ref, bd1_ref,
                wd2_ref, bd2_ref,
                recon_ref, head_ref):
    Z = eps_ref.shape[-1]

    # ---- encoder layer 1: cast f32 x -> bf16 in VMEM right before the MXU ----
    x = x_ref[...].astype(jnp.bfloat16)
    h = jnp.dot(x, we1_ref[...],
                preferred_element_type=jnp.float32) + be1_ref[...]
    h = jnp.maximum(h, 0.0)

    # ---- fused mu|logvar head: one bf16 matmul, lane-dense [B, 128] output ----
    head = jnp.dot(h.astype(jnp.bfloat16), whead_ref[...],
                   preferred_element_type=jnp.float32) + bhead_ref[...]
    mu = head[:, :Z]
    logvar = head[:, Z:2 * Z]

    # ---- reparameterization (f32 elementwise; exp on the EUP) ----
    z = mu + jnp.exp(0.5 * logvar) * eps_ref[...]

    # ---- decoder ----
    h2 = jnp.dot(z.astype(jnp.bfloat16), wd1_ref[...],
                 preferred_element_type=jnp.float32) + bd1_ref[...]
    h2 = jnp.maximum(h2, 0.0)

    logits = jnp.dot(h2.astype(jnp.bfloat16), wd2_ref[...],
                     preferred_element_type=jnp.float32) + bd2_ref[...]
    # sigmoid(x) = 0.5*tanh(0.5*x) + 0.5 : single EUP push, mul/add on the VALU.
    recon = 0.5 * jnp.tanh(0.5 * logits) + 0.5

    recon_ref[...] = recon.astype(recon_ref.dtype)
    head_ref[...] = head.astype(head_ref.dtype)


def _round_up(n, m):
    return (n + m - 1) // m * m


def _pick_tile_b(B):
    """Batch tile: big tiles for big batches; >=2 grid steps for mid batches
    (both v7x TensorCores engage); always a multiple of 8."""
    if B >= 1024:
        return 512
    if B >= 512:
        return 256
    if B >= 16:
        return min(256, max(8, _round_up(-(-B // 2), 8)))
    return _round_up(B, 8)


def vae_forward(x_nchw, params, eps):
    """x_nchw: [B, C, H, W] f32. Returns (recon [B, C*H*W] bf16, mu [B, Z] f32, logvar [B, Z] f32)."""
    we1, be1, whead, bhead, wd1, bd1, wd2, bd2 = params
    B = x_nchw.shape[0]
    D = x_nchw.shape[1] * x_nchw.shape[2] * x_nchw.shape[3]
    H = we1.shape[1]
    HEAD = whead.shape[1]          # lane-padded (128) fused head width
    Z = eps.shape[-1]

    # Flatten NCHW -> [B, D]: contiguous reshape, metadata only. NO wrapper-side
    # dtype cast: the kernel reads f32 and casts to bf16 in VMEM (saves one
    # f32-read + bf16-write HBM round trip).
    x = x_nchw.reshape(B, D)

    TILE_B = _pick_tile_b(B)
    B_pad = _round_up(B, TILE_B)
    if B_pad != B:
        x = jnp.pad(x, ((0, B_pad - B), (0, 0)))
        eps_p = jnp.pad(eps, ((0, B_pad - B), (0, 0)))
    else:
        eps_p = eps
    grid = (B_pad // TILE_B,)

    def batched(width):     # activation stream: tiled over the batch grid axis
        return pl.BlockSpec((TILE_B, width), lambda b: (b, 0))

    def pinned(shape):      # weights/biases: same (full-array) block every grid step
        return pl.BlockSpec(shape, lambda b: (0, 0))

    in_specs = [
        batched(D), batched(Z),
        pinned(we1.shape), pinned(be1.shape),
        pinned(whead.shape), pinned(bhead.shape),
        pinned(wd1.shape), pinned(bd1.shape),
        pinned(wd2.shape), pinned(bd2.shape),
    ]
    out_shapes = (
        jax.ShapeDtypeStruct((B_pad, D), jnp.bfloat16),   # recon (bf16 writeback)
        jax.ShapeDtypeStruct((B_pad, HEAD), jnp.float32),  # [mu | logvar | 0-pad] slab
    )
    out_specs = (batched(D), batched(HEAD))

    flops = 2 * B_pad * (D * H + H * HEAD + Z * H + H * D)
    transcendentals = B_pad * (Z + D)          # exp(0.5*logvar) + tanh per recon elem
    bytes_accessed = (
        x.size * x.dtype.itemsize
        + eps_p.size * eps_p.dtype.itemsize
        + sum(int(p.size) * p.dtype.itemsize for p in params)
        + B_pad * D * 2 + B_pad * HEAD * 4)

    recon, head = pl.pallas_call(
        _vae_kernel,
        out_shape=out_shapes,
        grid=grid,
        in_specs=in_specs,
        out_specs=out_specs,
        compiler_params=pltpu.CompilerParams(
            dimension_semantics=("parallel",)),
        cost_estimate=pl.CostEstimate(
            flops=flops,
            transcendentals=transcendentals,
            bytes_accessed=bytes_accessed),
    )(x, eps_p, we1, be1, whead, bhead, wd1, bd1, wd2, bd2)

    recon = recon[:B]
    mu = head[:B, :Z]
    logvar = head[:B, Z:2 * Z]
    return recon, mu, logvar


def vae_ref(x_nchw, params, eps):
    """Pure-JAX reference with the same (bf16-matmul, f32-accumulate) numerics."""
    we1, be1, whead, bhead, wd1, bd1, wd2, bd2 = params
    B = x_nchw.shape[0]
    D = we1.shape[0]
    Z = eps.shape[-1]
    x = x_nchw.reshape(B, D).astype(jnp.bfloat16)
    h = jnp.maximum(jnp.dot(x, we1, preferred_element_type=jnp.float32) + be1, 0.0)
    head = jnp.dot(h.astype(jnp.bfloat16), whead,
                   preferred_element_type=jnp.float32) + bhead
    mu, logvar = head[:, :Z], head[:, Z:2 * Z]
    z = mu + jnp.exp(0.5 * logvar) * eps
    h2 = jnp.maximum(jnp.dot(z.astype(jnp.bfloat16), wd1,
                             preferred_element_type=jnp.float32) + bd1, 0.0)
    logits = jnp.dot(h2.astype(jnp.bfloat16), wd2,
                     preferred_element_type=jnp.float32) + bd2
    return jax.nn.sigmoid(logits), mu, logvar


def init_params(key, d_in, hidden, latent):
    """nn.Linear-style init (uniform +-1/sqrt(fan_in)); weights [in, out], biases [1, out].
    Packed for the kernel: all weights bf16 (MXU operands, f32 accumulate);
    mu|logvar head fused and lane-padded to HEAD_LANES output columns."""
    def linear(k, fan_in, fan_out):
        kw, kb = jax.random.split(k)
        bound = 1.0 / jnp.sqrt(fan_in)
        w = jax.random.uniform(kw, (fan_in, fan_out), jnp.float32, -bound, bound)
        b = jax.random.uniform(kb, (1, fan_out), jnp.float32, -bound, bound)
        return w, b

    k1, k2, k3, k4, k5 = jax.random.split(key, 5)
    we1, be1 = linear(k1, d_in, hidden)     # encoder layer 1
    wmu, bmu = linear(k2, hidden, latent)   # mu head
    wlv, blv = linear(k3, hidden, latent)   # logvar head
    wd1, bd1 = linear(k4, latent, hidden)   # decoder layer 1
    wd2, bd2 = linear(k5, hidden, d_in)     # decoder output

    head_w = _round_up(2 * latent, HEAD_LANES)
    whead = jnp.zeros((hidden, head_w), jnp.float32)
    whead = whead.at[:, :latent].set(wmu).at[:, latent:2 * latent].set(wlv)
    bhead = jnp.zeros((1, head_w), jnp.float32)
    bhead = bhead.at[:, :latent].set(bmu).at[:, latent:2 * latent].set(blv)

    return (we1.astype(jnp.bfloat16), be1,
            whead.astype(jnp.bfloat16), bhead,
            wd1.astype(jnp.bfloat16), bd1,
            wd2.astype(jnp.bfloat16), bd2)


if __name__ == "__main__":
    key = jax.random.PRNGKey(0)
    kx, keps, kparams = jax.random.split(key, 3)

    B, C, Hs, Ws = 2, 4, 16, 16
    D_IN = C * Hs * Ws     # 1024
    HIDDEN = 32
    LATENT = 8

    x = jax.random.normal(kx, (B, C, Hs, Ws), jnp.float32)
    eps = jax.random.normal(keps, (B, LATENT), jnp.float32)
    params = init_params(kparams, D_IN, HIDDEN, LATENT)

    recon, mu, logvar = vae_forward(x, params, eps)
    jax.block_until_ready((recon, mu, logvar))

    assert recon.shape == (B, D_IN) and recon.dtype == jnp.bfloat16
    assert mu.shape == (B, LATENT) and mu.dtype == jnp.float32
    assert logvar.shape == (B, LATENT) and logvar.dtype == jnp.float32

    # Correctness check against a pure-JAX reference (recon is bf16 -> loose tol).
    recon_r, mu_r, logvar_r = vae_ref(x, params, eps)
    assert bool(jnp.allclose(mu, mu_r, atol=1e-3, rtol=1e-3))
    assert bool(jnp.allclose(logvar, logvar_r, atol=1e-3, rtol=1e-3))
    assert bool(jnp.allclose(recon.astype(jnp.float32), recon_r, atol=1e-2, rtol=1e-2))

    print("KERNEL_OK")
</pallas_src>

<mosaic_0001>
module attributes {stable_mosaic.version = 11 : i64} {
  func.func @_vae_kernel(%arg0: i32, %arg1: memref<8x1024xf32, #tpu.memory_space<vmem>>, %arg2: memref<8x8xf32, #tpu.memory_space<vmem>>, %arg3: memref<1024x32xbf16, #tpu.memory_space<vmem>>, %arg4: memref<1x32xf32, #tpu.memory_space<vmem>>, %arg5: memref<32x128xbf16, #tpu.memory_space<vmem>>, %arg6: memref<1x128xf32, #tpu.memory_space<vmem>>, %arg7: memref<8x32xbf16, #tpu.memory_space<vmem>>, %arg8: memref<1x32xf32, #tpu.memory_space<vmem>>, %arg9: memref<32x1024xbf16, #tpu.memory_space<vmem>>, %arg10: memref<1x1024xf32, #tpu.memory_space<vmem>>, %arg11: memref<8x1024xbf16, #tpu.memory_space<vmem>>, %arg12: memref<8x128xf32, #tpu.memory_space<vmem>>) attributes {dimension_semantics = [#tpu.dimension_semantics<parallel>], iteration_bounds = array<i64: 1>, scalar_prefetch = 0 : i64, scratch_operands = 0 : i64, tpu.core_type = #tpu.core_type<tc>, window_params = [{transform_indices = @transform_0, window_bounds = array<i64: 8, 1024>}, {transform_indices = @transform_1, window_bounds = array<i64: 8, 8>}, {pipeline_mode = #tpu.pipeline_mode<synchronous>, transform_indices = @transform_2, window_bounds = array<i64: 1024, 32>}, {pipeline_mode = #tpu.pipeline_mode<synchronous>, transform_indices = @transform_3, window_bounds = array<i64: 1, 32>}, {pipeline_mode = #tpu.pipeline_mode<synchronous>, transform_indices = @transform_4, window_bounds = array<i64: 32, 128>}, {pipeline_mode = #tpu.pipeline_mode<synchronous>, transform_indices = @transform_5, window_bounds = array<i64: 1, 128>}, {pipeline_mode = #tpu.pipeline_mode<synchronous>, transform_indices = @transform_6, window_bounds = array<i64: 8, 32>}, {pipeline_mode = #tpu.pipeline_mode<synchronous>, transform_indices = @transform_7, window_bounds = array<i64: 1, 32>}, {pipeline_mode = #tpu.pipeline_mode<synchronous>, transform_indices = @transform_8, window_bounds = array<i64: 32, 1024>}, {pipeline_mode = #tpu.pipeline_mode<synchronous>, transform_indices = @transform_9, window_bounds = array<i64: 1, 1024>}, {transform_indices = @transform_10, window_bounds = array<i64: 8, 1024>}, {transform_indices = @transform_11, window_bounds = array<i64: 8, 128>}]} {
    %c0 = arith.constant 0 : index
    %c0_0 = arith.constant 0 : index
    %0 = vector.load %arg1[%c0, %c0_0] : memref<8x1024xf32, #tpu.memory_space<vmem>>, vector<8x1024xf32>
    %1 = arith.truncf %0 : vector<8x1024xf32> to vector<8x1024xbf16>
    %c0_1 = arith.constant 0 : index
    %c0_2 = arith.constant 0 : index
    %2 = vector.load %arg3[%c0_1, %c0_2] : memref<1024x32xbf16, #tpu.memory_space<vmem>>, vector<1024x32xbf16>
    %cst = arith.constant dense<0.000000e+00> : vector<8x32xf32>
    %3 = tpu.matmul %1, %2, %cst {dimension_numbers = #tpu.dot_dimension_numbers<[1], [0], [0], [1], [0, 0, 1, 1], [], []>} : vector<8x1024xbf16>, vector<1024x32xbf16>, vector<8x32xf32> -> vector<8x32xf32>
    %c0_3 = arith.constant 0 : index
    %c0_4 = arith.constant 0 : index
    %4 = vector.load %arg4[%c0_3, %c0_4] : memref<1x32xf32, #tpu.memory_space<vmem>>, vector<1x32xf32>
    %5 = vector.broadcast %4 : vector<1x32xf32> to vector<8x32xf32>
    %6 = arith.addf %3, %5 : vector<8x32xf32>
    %cst_5 = arith.constant 0.000000e+00 : f32
    %7 = vector.broadcast %cst_5 : f32 to vector<8x32xf32>
    %8 = arith.maximumf %6, %7 : vector<8x32xf32>
    %9 = arith.truncf %8 : vector<8x32xf32> to vector<8x32xbf16>
    %c0_6 = arith.constant 0 : index
    %c0_7 = arith.constant 0 : index
    %10 = vector.load %arg5[%c0_6, %c0_7] : memref<32x128xbf16, #tpu.memory_space<vmem>>, vector<32x128xbf16>
    %cst_8 = arith.constant dense<0.000000e+00> : vector<8x128xf32>
    %11 = tpu.matmul %9, %10, %cst_8 {dimension_numbers = #tpu.dot_dimension_numbers<[1], [0], [0], [1], [0, 0, 1, 1], [], []>} : vector<8x32xbf16>, vector<32x128xbf16>, vector<8x128xf32> -> vector<8x128xf32>
    %c0_9 = arith.constant 0 : index
    %c0_10 = arith.constant 0 : index
    %12 = vector.load %arg6[%c0_9, %c0_10] : memref<1x128xf32, #tpu.memory_space<vmem>>, vector<1x128xf32>
    %13 = vector.broadcast %12 : vector<1x128xf32> to vector<8x128xf32>
    %14 = arith.addf %11, %13 : vector<8x128xf32>
    %15 = vector.extract_strided_slice %14 {offsets = [0, 0], sizes = [8, 8], strides = [1, 1]} : vector<8x128xf32> to vector<8x8xf32>
    %16 = vector.extract_strided_slice %14 {offsets = [0, 8], sizes = [8, 8], strides = [1, 1]} : vector<8x128xf32> to vector<8x8xf32>
    %cst_11 = arith.constant 5.000000e-01 : f32
    %17 = vector.broadcast %cst_11 : f32 to vector<8x8xf32>
    %18 = arith.mulf %17, %16 : vector<8x8xf32>
    %19 = math.exp %18 : vector<8x8xf32>
    %c0_12 = arith.constant 0 : index
    %c0_13 = arith.constant 0 : index
    %20 = vector.load %arg2[%c0_12, %c0_13] : memref<8x8xf32, #tpu.memory_space<vmem>>, vector<8x8xf32>
    %21 = arith.mulf %19, %20 : vector<8x8xf32>
    %22 = arith.addf %15, %21 : vector<8x8xf32>
    %23 = arith.truncf %22 : vector<8x8xf32> to vector<8x8xbf16>
    %c0_14 = arith.constant 0 : index
    %c0_15 = arith.constant 0 : index
    %24 = vector.load %arg7[%c0_14, %c0_15] : memref<8x32xbf16, #tpu.memory_space<vmem>>, vector<8x32xbf16>
    %cst_16 = arith.constant dense<0.000000e+00> : vector<8x32xf32>
    %25 = tpu.matmul %23, %24, %cst_16 {dimension_numbers = #tpu.dot_dimension_numbers<[1], [0], [0], [1], [0, 0, 1, 1], [], []>} : vector<8x8xbf16>, vector<8x32xbf16>, vector<8x32xf32> -> vector<8x32xf32>
    %c0_17 = arith.constant 0 : index
    %c0_18 = arith.constant 0 : index
    %26 = vector.load %arg8[%c0_17, %c0_18] : memref<1x32xf32, #tpu.memory_space<vmem>>, vector<1x32xf32>
    %27 = vector.broadcast %26 : vector<1x32xf32> to vector<8x32xf32>
    %28 = arith.addf %25, %27 : vector<8x32xf32>
    %cst_19 = arith.constant 0.000000e+00 : f32
    %29 = vector.broadcast %cst_19 : f32 to vector<8x32xf32>
    %30 = arith.maximumf %28, %29 : vector<8x32xf32>
    %31 = arith.truncf %30 : vector<8x32xf32> to vector<8x32xbf16>
    %c0_20 = arith.constant 0 : index
    %c0_21 = arith.constant 0 : index
    %32 = vector.load %arg9[%c0_20, %c0_21] : memref<32x1024xbf16, #tpu.memory_space<vmem>>, vector<32x1024xbf16>
    %cst_22 = arith.constant dense<0.000000e+00> : vector<8x1024xf32>
    %33 = tpu.matmul %31, %32, %cst_22 {dimension_numbers = #tpu.dot_dimension_numbers<[1], [0], [0], [1], [0, 0, 1, 1], [], []>} : vector<8x32xbf16>, vector<32x1024xbf16>, vector<8x1024xf32> -> vector<8x1024xf32>
    %c0_23 = arith.constant 0 : index
    %c0_24 = arith.constant 0 : index
    %34 = vector.load %arg10[%c0_23, %c0_24] : memref<1x1024xf32, #tpu.memory_space<vmem>>, vector<1x1024xf32>
    %35 = vector.broadcast %34 : vector<1x1024xf32> to vector<8x1024xf32>
    %36 = arith.addf %33, %35 : vector<8x1024xf32>
    %cst_25 = arith.constant 5.000000e-01 : f32
    %37 = vector.broadcast %cst_25 : f32 to vector<8x1024xf32>
    %38 = arith.mulf %37, %36 : vector<8x1024xf32>
    %39 = math.tanh %38 : vector<8x1024xf32>
    %cst_26 = arith.constant 5.000000e-01 : f32
    %40 = vector.broadcast %cst_26 : f32 to vector<8x1024xf32>
    %41 = arith.mulf %40, %39 : vector<8x1024xf32>
    %cst_27 = arith.constant 5.000000e-01 : f32
    %42 = vector.broadcast %cst_27 : f32 to vector<8x1024xf32>
    %43 = arith.addf %41, %42 : vector<8x1024xf32>
    %44 = arith.truncf %43 : vector<8x1024xf32> to vector<8x1024xbf16>
    %c0_28 = arith.constant 0 : index
    %c0_29 = arith.constant 0 : index
    %45 = vector.load %arg11[%c0_28, %c0_29] : memref<8x1024xbf16, #tpu.memory_space<vmem>>, vector<8x1024xbf16>
    tpu.vector_store %arg11[%c0_28, %c0_29], %44 {strides = array<i32>} : memref<8x1024xbf16, #tpu.memory_space<vmem>>, vector<8x1024xbf16>,
    %c0_30 = arith.constant 0 : index
    %c0_31 = arith.constant 0 : index
    %46 = vector.load %arg12[%c0_30, %c0_31] : memref<8x128xf32, #tpu.memory_space<vmem>>, vector<8x128xf32>
    tpu.vector_store %arg12[%c0_30, %c0_31], %14 {strides = array<i32>} : memref<8x128xf32, #tpu.memory_space<vmem>>, vector<8x128xf32>,
    return
  }
  func.func @transform_0(%arg0: i32) -> (i32, i32) {
    %c0_i32 = arith.constant 0 : i32
    %c0_i32_0 = arith.constant 0 : i32
    return %arg0, %c0_i32 : i32, i32
  }
  func.func @transform_1(%arg0: i32) -> (i32, i32) {
    %c0_i32 = arith.constant 0 : i32
    %c0_i32_0 = arith.constant 0 : i32
    return %arg0, %c0_i32 : i32, i32
  }
  func.func @transform_2(%arg0: i32) -> (i32, i32) {
    %c0_i32 = arith.constant 0 : i32
    %c0_i32_0 = arith.constant 0 : i32
    %c0_i32_1 = arith.constant 0 : i32
    return %c0_i32, %c0_i32_0 : i32, i32
  }
  func.func @transform_3(%arg0: i32) -> (i32, i32) {
    %c0_i32 = arith.constant 0 : i32
    %c0_i32_0 = arith.constant 0 : i32
    %c0_i32_1 = arith.constant 0 : i32
    return %c0_i32, %c0_i32_0 : i32, i32
  }
  func.func @transform_4(%arg0: i32) -> (i32, i32) {
    %c0_i32 = arith.constant 0 : i32
    %c0_i32_0 = arith.constant 0 : i32
    %c0_i32_1 = arith.constant 0 : i32
    return %c0_i32, %c0_i32_0 : i32, i32
  }
  func.func @transform_5(%arg0: i32) -> (i32, i32) {
    %c0_i32 = arith.constant 0 : i32
    %c0_i32_0 = arith.constant 0 : i32
    %c0_i32_1 = arith.constant 0 : i32
    return %c0_i32, %c0_i32_0 : i32, i32
  }
  func.func @transform_6(%arg0: i32) -> (i32, i32) {
    %c0_i32 = arith.constant 0 : i32
    %c0_i32_0 = arith.constant 0 : i32
    %c0_i32_1 = arith.constant 0 : i32
    return %c0_i32, %c0_i32_0 : i32, i32
  }
  func.func @transform_7(%arg0: i32) -> (i32, i32) {
    %c0_i32 = arith.constant 0 : i32
    %c0_i32_0 = arith.constant 0 : i32
    %c0_i32_1 = arith.constant 0 : i32
    return %c0_i32, %c0_i32_0 : i32, i32
  }
  func.func @transform_8(%arg0: i32) -> (i32, i32) {
    %c0_i32 = arith.constant 0 : i32
    %c0_i32_0 = arith.constant 0 : i32
    %c0_i32_1 = arith.constant 0 : i32
    return %c0_i32, %c0_i32_0 : i32, i32
  }
  func.func @transform_9(%arg0: i32) -> (i32, i32) {
    %c0_i32 = arith.constant 0 : i32
    %c0_i32_0 = arith.constant 0 : i32
    %c0_i32_1 = arith.constant 0 : i32
    return %c0_i32, %c0_i32_0 : i32, i32
  }
  func.func @transform_10(%arg0: i32) -> (i32, i32) {
    %c0_i32 = arith.constant 0 : i32
    %c0_i32_0 = arith.constant 0 : i32
    return %arg0, %c0_i32 : i32, i32
  }
  func.func @transform_11(%arg0: i32) -> (i32, i32) {
    %c0_i32 = arith.constant 0 : i32
    %c0_i32_0 = arith.constant 0 : i32
    return %arg0, %c0_i32 : i32, i32
  }
}

</mosaic_0001>

<bundles_post_ra>
// kernel: tpu_custom_call.1
= control target key start
LH: loop header
LB: loop body
LE: loop exit
PB: predicated region body
PF: predicated region fallthrough
CT: control target
= control target key end

     0   :  { %17 = vsyncpa [#allocation3], 0  ;;  %s2008_s0 = inlined_call_operand.vmem [shape: f32[8,1024], index: 0, kind: input, shape index: {}]   ;;  %s2009_s1 = inlined_call_operand.vmem [shape: f32[8,8], index: 1, kind: input, shape index: {}]   ;;  %s2010_s2 = inlined_call_operand.vmem [shape: bf16[1024,32], index: 2, kind: input, shape index: {}]   ;;  %s2011_s3 = inlined_call_operand.vmem [shape: f32[1,32], index: 3, kind: input, shape index: {}]   ;;  %s2012_s4 = inlined_call_operand.vmem [shape: bf16[32,128], index: 4, kind: input, shape index: {}]   ;;  %s2013_s5 = inlined_call_operand.vmem [shape: f32[1,128], index: 5, kind: input, shape index: {}]   ;;  %s2014_s6 = inlined_call_operand.vmem [shape: bf16[8,32], index: 6, kind: input, shape index: {}]   ;;  %s2015_s7 = inlined_call_operand.vmem [shape: f32[1,32], index: 7, kind: input, shape index: {}]   ;;  %s2016_s8 = inlined_call_operand.vmem [shape: bf16[32,1024], index: 8, kind: input, shape index: {}]   ;;  %s2017_s9 = inlined_call_operand.vmem [shape: f32[1,1024], index: 9, kind: input, shape index: {}]   ;;  %s2018_s10 = inlined_call_operand.hbm [shape: bf16[8,1024], index: 10, kind: output, shape index: {0}]   ;;  %s2019_s11 = inlined_call_operand.hbm [shape: f32[8,128], index: 11, kind: output, shape index: {1}]  }
   0x1   :  { %v1492_v0 = vld [vmem:[%s2010_s2 + $0x40] sm:$0xff]   ;;  %v1496_v4 = vld [vmem:[%s2010_s2 + $0x48] sm:$0xff]   ;;  %v1500_v8 = vld [vmem:[%s2010_s2 + $0x50] sm:$0xff]  }
   0x2   :  { %v1493_v1 = vld [vmem:[%s2010_s2 + $0xc0] sm:$0xff]   ;;  %1378 = vmatprep.subr.bf16.mxu0 %v1492_v0  ;;  %v1497_v5 = vld [vmem:[%s2010_s2 + $0xc8] sm:$0xff]   ;;  %v1501_v9 = vld [vmem:[%s2010_s2 + $0xd0] sm:$0xff]  }
   0x3   :  { %v1494_v2 = vld [vmem:[%s2010_s2] sm:$0xff]   ;;  %1400 = vmatprep.subr.bf16.mxu1 %v1493_v1  ;;  %v1498_v6 = vld [vmem:[%s2010_s2 + $0x8] sm:$0xff]   ;;  %v1502_v10 = vld [vmem:[%s2010_s2 + $0x10] sm:$0xff]  }
   0x4   :  { %v1495_v3 = vld [vmem:[%s2010_s2 + $0x80] sm:$0xff]   ;;  %1379 = vmatpush3.bf16.msra.mxu0 %v1494_v2  ;;  %v1499_v7 = vld [vmem:[%s2010_s2 + $0x88] sm:$0xff]   ;;  %v1503_v11 = vld [vmem:[%s2010_s2 + $0x90] sm:$0xff]  }
   0x5   :  { %1401 = vmatpush3.bf16.msra.mxu1 %v1495_v3  ;;  %1380 = vmatprep.subr.bf16.mxu0 %v1496_v4  ;;  %v1504_v12 = vld [vmem:[%s2010_s2 + $0x58] sm:$0xff]   ;;  %v1508_v16 = vld [vmem:[%s2010_s2 + $0x60] sm:$0xff]   ;;  %v1512_v20 = vld [vmem:[%s2010_s2 + $0x68] sm:$0xff]  }
   0x6   :  { %1402 = vmatprep.subr.bf16.mxu1 %v1497_v5  ;;  %v1505_v13 = vld [vmem:[%s2010_s2 + $0xd8] sm:$0xff]   ;;  %v1509_v17 = vld [vmem:[%s2010_s2 + $0xe0] sm:$0xff]   ;;  %v1513_v21 = vld [vmem:[%s2010_s2 + $0xe8] sm:$0xff]  }
   0x7   :  { %v1506_v14 = vld [vmem:[%s2010_s2 + $0x18] sm:$0xff]   ;;  %v1510_v18 = vld [vmem:[%s2010_s2 + $0x20] sm:$0xff]   ;;  %v1514_v22 = vld [vmem:[%s2010_s2 + $0x28] sm:$0xff]  }
   0x8   :  { %1381 = vmatpush3.bf16.msra.mxu0 %v1498_v6  ;;  %v1507_v15 = vld [vmem:[%s2010_s2 + $0x98] sm:$0xff]   ;;  %v1511_v19 = vld [vmem:[%s2010_s2 + $0xa0] sm:$0xff]   ;;  %v1515_v23 = vld [vmem:[%s2010_s2 + $0xa8] sm:$0xff]  }
   0x9   :  { %1403 = vmatpush3.bf16.msra.mxu1 %v1499_v7  ;;  %1382 = vmatprep.subr.bf16.mxu0 %v1500_v8  ;;  %v1516_v24 = vld [vmem:[%s2010_s2 + $0x70] sm:$0xff]   ;;  %v1520_v28 = vld [vmem:[%s2010_s2 + $0x78] sm:$0xff]   ;;  %v41_v32 = vld [vmem:[%s2008_s0 + $0x8] sm:$0xff] }
   0xa   :  { %1404 = vmatprep.subr.bf16.mxu1 %v1501_v9  ;;  %v1517_v25 = vld [vmem:[%s2010_s2 + $0xf0] sm:$0xff]   ;;  %v1521_v29 = vld [vmem:[%s2010_s2 + $0xf8] sm:$0xff]   ;;  %v40_v34 = vld [vmem:[%s2008_s0] sm:$0xff]  ;;  %v49_v35 = vpack.c.bf16 %v41_v32, %v41_v32 }
   0xb   :  { %v1518_v26 = vld [vmem:[%s2010_s2 + $0x30] sm:$0xff]   ;;  %v1522_v30 = vld [vmem:[%s2010_s2 + $0x38] sm:$0xff]   ;;  %v48_v37 = vpack.c.bf16 %v40_v34, %v40_v34  ;;  %v1524_v40 = vld [vmem:[%s2010_s2 + $0x140] sm:$0xff]  }
   0xc   :  { %1383 = vmatpush3.bf16.msra.mxu0 %v1502_v10  ;;  %v1519_v27 = vld [vmem:[%s2010_s2 + $0xb0] sm:$0xff]   ;;  %v1523_v31 = vld [vmem:[%s2010_s2 + $0xb8] sm:$0xff]   ;;  %607 = vmatprep.mubr.bf16.mxu0 %v49_v35  ;;  %v1525_v41 = vld [vmem:[%s2010_s2 + $0x1c0] sm:$0xff]  }
   0xd   :  { %1405 = vmatpush3.bf16.msra.mxu1 %v1503_v11  ;;  %1384 = vmatprep.subr.bf16.mxu0 %v1504_v12  ;;  %v43_v33 = vld [vmem:[%s2008_s0 + $0x18] sm:$0xff]  ;;  %v42_v38 = vld [vmem:[%s2008_s0 + $0x10] sm:$0xff]  ;;  %v1526_v42 = vld [vmem:[%s2010_s2 + $0x100] sm:$0xff]  }
   0xe   :  { %1406 = vmatprep.subr.bf16.mxu1 %v1505_v13  ;;  %v51_v36 = vpack.c.bf16 %v43_v33, %v43_v33  ;;  %v50_v39 = vpack.c.bf16 %v42_v38, %v42_v38  ;;  %v1527_v43 = vld [vmem:[%s2010_s2 + $0x180] sm:$0xff]   ;;  %v1528_v44 = vld [vmem:[%s2010_s2 + $0x148] sm:$0xff]   ;;  %v1532_v48 = vld [vmem:[%s2010_s2 + $0x150] sm:$0xff]  }
   0xf   :  { %v1529_v45 = vld [vmem:[%s2010_s2 + $0x1c8] sm:$0xff]   ;;  %v1533_v49 = vld [vmem:[%s2010_s2 + $0x1d0] sm:$0xff]   ;;  %v1536_v52 = vld [vmem:[%s2010_s2 + $0x158] sm:$0xff]  }
  0x10   :  { %1385 = vmatpush3.bf16.msra.mxu0 %v1506_v14  ;;  %647 = vmatprep.mubr.bf16.mxu1 %v51_v36  ;;  %v1530_v46 = vld [vmem:[%s2010_s2 + $0x108] sm:$0xff]   ;;  %v1534_v50 = vld [vmem:[%s2010_s2 + $0x110] sm:$0xff]   ;;  %v1537_v53 = vld [vmem:[%s2010_s2 + $0x1d8] sm:$0xff]  }
  0x11   :  { %1407 = vmatpush3.bf16.msra.mxu1 %v1507_v15  ;;  %1386 = vmatprep.subr.bf16.mxu0 %v1508_v16  ;;  %v1531_v47 = vld [vmem:[%s2010_s2 + $0x188] sm:$0xff]   ;;  %v1535_v51 = vld [vmem:[%s2010_s2 + $0x190] sm:$0xff]   ;;  %v1538_v54 = vld [vmem:[%s2010_s2 + $0x118] sm:$0xff]  }
  0x12   :  { %1408 = vmatprep.subr.bf16.mxu1 %v1509_v17  ;;  %v1539_v55 = vld [vmem:[%s2010_s2 + $0x198] sm:$0xff]   ;;  %v1540_v56 = vld [vmem:[%s2010_s2 + $0x160] sm:$0xff]   ;;  %v1544_v60 = vld [vmem:[%s2010_s2 + $0x168] sm:$0xff]  }
  0x13   :  { %v1541_v57 = vld [vmem:[%s2010_s2 + $0x1e0] sm:$0xff]   ;;  %v1545_v61 = vld [vmem:[%s2010_s2 + $0x1e8] sm:$0xff]   ;;  %v1548_v0 = vld [vmem:[%s2010_s2 + $0x170] sm:$0xff]  }
  0x14   :  { %1387 = vmatpush3.bf16.msra.mxu0 %v1510_v18  ;;  %v1542_v58 = vld [vmem:[%s2010_s2 + $0x120] sm:$0xff]   ;;  %v1546_v62 = vld [vmem:[%s2010_s2 + $0x128] sm:$0xff]   ;;  %v1549_v1 = vld [vmem:[%s2010_s2 + $0x1f0] sm:$0xff]  }
  0x15   :  { %1409 = vmatpush3.bf16.msra.mxu1 %v1511_v19  ;;  %1388 = vmatprep.subr.bf16.mxu0 %v1512_v20  ;;  %v1543_v59 = vld [vmem:[%s2010_s2 + $0x1a0] sm:$0xff]   ;;  %v1547_v63 = vld [vmem:[%s2010_s2 + $0x1a8] sm:$0xff]   ;;  %v1550_v2 = vld [vmem:[%s2010_s2 + $0x130] sm:$0xff]  }
  0x16   :  { %1410 = vmatprep.subr.bf16.mxu1 %v1513_v21  ;;  %v1551_v3 = vld [vmem:[%s2010_s2 + $0x1b0] sm:$0xff]   ;;  %v1552_v4 = vld [vmem:[%s2010_s2 + $0x178] sm:$0xff]   ;;  %v45_v8 = vld [vmem:[%s2008_s0 + $0x28] sm:$0xff] }
  0x17   :  { %v1553_v5 = vld [vmem:[%s2010_s2 + $0x1f8] sm:$0xff]   ;;  %v53_v10 = vpack.c.bf16 %v45_v8, %v45_v8  ;;  %v44_v12 = vld [vmem:[%s2008_s0 + $0x20] sm:$0xff]  ;;  %v46_v13 = vld [vmem:[%s2008_s0 + $0x30] sm:$0xff] }
  0x18   :  { %1389 = vmatpush3.bf16.msra.mxu0 %v1514_v22  ;;  %v1554_v6 = vld [vmem:[%s2010_s2 + $0x138] sm:$0xff]   ;;  %v52_v14 = vpack.c.bf16 %v44_v12, %v44_v12  ;;  %v54_v15 = vpack.c.bf16 %v46_v13, %v46_v13 }
  0x19   :  { %1411 = vmatpush3.bf16.msra.mxu1 %v1515_v23  ;;  %1390 = vmatprep.subr.bf16.mxu0 %v1516_v24  ;;  %v1555_v7 = vld [vmem:[%s2010_s2 + $0x1b8] sm:$0xff]  }
  0x1a   :  { %1412 = vmatprep.subr.bf16.mxu1 %v1517_v25  ;;  %v47_v9 = vld [vmem:[%s2008_s0 + $0x38] sm:$0xff] }
  0x1b   :  { %v55_v11 = vpack.c.bf16 %v47_v9, %v47_v9 }
  0x1c   :  { %1391 = vmatpush3.bf16.msra.mxu0 %v1518_v26 }
  0x1d   :  { %1413 = vmatpush3.bf16.msra.mxu1 %v1519_v27  ;;  %1392 = vmatprep.subr.bf16.mxu0 %v1520_v28 }
  0x1e   :  { %1414 = vmatprep.subr.bf16.mxu1 %v1521_v29 }
  0x20   :  { %1393 = vmatpush3.bf16.msra.mxu0 %v1522_v30 }
  0x21   :  { %1415 = vmatpush3.bf16.msra.mxu1 %v1523_v31  ;;  %1422 = vmatprep.subr.bf16.mxu0 %v1524_v40 }
  0x22   :  { %1444 = vmatprep.subr.bf16.mxu1 %v1525_v41 }
  0x23   :  { %608 = vmatmul.mubr.bf16.vlgmr.msra.gmra.mrb[0].mxu0 %v48_v37 }
  0x24   :  { %648 = vmatmul.mubr.bf16.vlgmr.msra.gmra.mrb[0].mxu1 %v50_v39  ;;  %1423 = vmatpush3.bf16.msra.mxu0 %v1526_v42 }
  0x25   :  { %1445 = vmatpush3.bf16.msra.mxu1 %v1527_v43  ;;  %1424 = vmatprep.subr.bf16.mxu0 %v1528_v44 }
  0x26   :  { %1446 = vmatprep.subr.bf16.mxu1 %v1529_v45  ;;  %687 = vmatprep.mubr.bf16.mxu0 %v53_v10 }
  0x27   :  { %727 = vmatprep.mubr.bf16.mxu1 %v55_v11 }
  0x28   :  { %1425 = vmatpush3.bf16.msra.mxu0 %v1530_v46 }
  0x29   :  { %1447 = vmatpush3.bf16.msra.mxu1 %v1531_v47  ;;  %1426 = vmatprep.subr.bf16.mxu0 %v1532_v48 }
  0x2a   :  { %1448 = vmatprep.subr.bf16.mxu1 %v1533_v49 }
  0x2c   :  { %1427 = vmatpush3.bf16.msra.mxu0 %v1534_v50 }
  0x2d   :  { %1449 = vmatpush3.bf16.msra.mxu1 %v1535_v51  ;;  %1428 = vmatprep.subr.bf16.mxu0 %v1536_v52 }
  0x2e   :  { %1450 = vmatprep.subr.bf16.mxu1 %v1537_v53 }
  0x30   :  { %1429 = vmatpush3.bf16.msra.mxu0 %v1538_v54 }
  0x31   :  { %1451 = vmatpush3.bf16.msra.mxu1 %v1539_v55  ;;  %1430 = vmatprep.subr.bf16.mxu0 %v1540_v56 }
  0x32   :  { %1452 = vmatprep.subr.bf16.mxu1 %v1541_v57 }
  0x34   :  { %1431 = vmatpush3.bf16.msra.mxu0 %v1542_v58 }
  0x35   :  { %1453 = vmatpush3.bf16.msra.mxu1 %v1543_v59  ;;  %1432 = vmatprep.subr.bf16.mxu0 %v1544_v60 }
  0x36   :  { %1454 = vmatprep.subr.bf16.mxu1 %v1545_v61 }
  0x38   :  { %1433 = vmatpush3.bf16.msra.mxu0 %v1546_v62 }
  0x39   :  { %1455 = vmatpush3.bf16.msra.mxu1 %v1547_v63  ;;  %1434 = vmatprep.subr.bf16.mxu0 %v1548_v0 }
  0x3a   :  { %1456 = vmatprep.subr.bf16.mxu1 %v1549_v1 }
  0x3c   :  { %1435 = vmatpush3.bf16.msra.mxu0 %v1550_v2 }
  0x3d   :  { %1457 = vmatpush3.bf16.msra.mxu1 %v1551_v3  ;;  %1436 = vmatprep.subr.bf16.mxu0 %v1552_v4 }
  0x3e   :  { %1458 = vmatprep.subr.bf16.mxu1 %v1553_v5 }
  0x40   :  { %1437 = vmatpush3.bf16.msra.mxu0 %v1554_v6 }
  0x41   :  { %1459 = vmatpush3.bf16.msra.mxu1 %v1555_v7 }
  0x42   :  { %18 = vsyncpa [#allocation5], 0  ;;  %v1556_v16 = vld [vmem:[%s2012_s4] sm:$0xff]   ;;  %v1624_v17 = vmov 0.0   ;;  %v1557_v18 = vld [vmem:[%s2012_s4 + $0x8] sm:$0xff]   ;;  %vm1625_vm0 = vmmov 0  }
  0x43   :  { %688 = vmatmul.mubr.bf16.vlgmr.msra.gmra.mrb[4].mxu0 %v52_v14  ;;  %1471 = vmatprep.subr.bf16.mxu0 %v1624_v17  ;;  %v807_v19 = vld [vmem:[%s2009_s1] sm:$0xff]  ;;  %s1626_s13 = smov 8   ;;  %vm760_vm1 = vcmask 261120   ;;  %vm831_vm2 = vcmask 1043456   ;;  %v878_v59 = vld [vmem:[%s2016_s8 + $0x8] sm:$0xff]  ;;  %s1627_s23 = smov 120  }
  0x44   :  { %728 = vmatmul.mubr.bf16.vlgmr.msra.gmra.mrb[4].mxu1 %v54_v15  ;;  %1479 = vmatprep.subr.bf16.mxu1 %v1624_v17  ;;  %v1279_v22 = vld [vmem:[%s2011_s3] ss:$0 sm:$0xff]  ;;  %v882_v62 = vld [vmem:[%s2016_s8 + $0x28] sm:$0xff]  ;;  %vm827_vm3 = vcmask 64512   ;;  %v879_v15 = vld [vmem:[%s2016_s8 + $0x10] sm:$0xff] }
  0x45   :  { %1472 = vmatpush3.bf16.msra.mxu0 %v1556_v16  ;;  %1475 = vmatprep.mubr.msk.bf16.mxu0 %vm1625_vm0, %v1624_v17  ;;  %v819_v47 = vld [vmem:[%s2014_s6] sm:$0xf]  ;;  %v1352_v63 = vcombine.low %v878_v59, %v882_v62  ;;  %v1353_v0 = vcombine.high %v878_v59, %v882_v62  ;;  %v886_v9 = vld [vmem:[%s2016_s8 + $0x48] sm:$0xff]  ;;  %v883_v16 = vld [vmem:[%s2016_s8 + $0x30] sm:$0xff] }
  0x46   :  { %1473 = vmatprep.subr.bf16.mxu0 %v1624_v17  ;;  %1481 = vmatprep.mubr.msk.bf16.mxu1 %vm1625_vm0, %v1624_v17  ;;  %v833_v48 = vsel %vm831_vm2, %v819_v47, 0  ;;  %v1344_v49 = vld [vmem:[%s2013_s5] ss:$0 sm:$0xff]  ;;  %v890_v11 = vld [vmem:[%s2016_s8 + $0x68] sm:$0xff]  ;;  %v880_v17 = vld [vmem:[%s2016_s8 + $0x18] sm:$0xff] }
  0x47   :  { %809 = vrot.lane.b32.xlu0 %v807_v19, %s1626_s13  ;;  %1480 = vmatpush3.bf16.msra.mxu1 %v833_v48  ;;  %v877_v57 = vld [vmem:[%s2016_s8] sm:$0xff]  ;;  %v1360_v13 = vcombine.low %v886_v9, %v890_v11  ;;  %v1361_v14 = vcombine.high %v886_v9, %v890_v11  ;;  %v1354_v19 = vcombine.low %v879_v15, %v883_v16 }
  0x48   :  { %v881_v58 = vld [vmem:[%s2016_s8 + $0x20] sm:$0xff]  ;;  %1059 = vmatprep.subr.bf16.mxu1 %v1353_v0 }
  0x49   :  { %1474 = vmatpush3.bf16.msra.mxu0 %v1557_v18  ;;  %v1350_v60 = vcombine.low %v877_v57, %v881_v58  ;;  %v1351_v61 = vcombine.high %v877_v57, %v881_v58  ;;  %v885_v7 = vld [vmem:[%s2016_s8 + $0x40] sm:$0xff]  ;;  %v1628_v18 = vmov 0  }
  0x4a   :  { %v889_v8 = vld [vmem:[%s2016_s8 + $0x60] sm:$0xff] }
  0x4b   :  { %1018 = vmatprep.subr.bf16.mxu0 %v1351_v61  ;;  %v1359_v10 = vcombine.high %v885_v7, %v889_v8  ;;  %v1358_v12 = vcombine.low %v885_v7, %v889_v8 }
  0xb9   :  { %v810_v1 = vpop.permute.xlu0 %809 }
  0xf6   :  { %v1394_v20 = vpop.f32.mrb[0].mxu0 }
  0xf7   :  { %v1416_v21 = vpop.f32.mrb[0].mxu1  ;;  %v1395_v23 = vpop.f32.mrb[1].mxu0 }
  0xf8   :  { %v1417_v24 = vpop.f32.mrb[1].mxu1  ;;  %v1396_v25 = vadd.f32 %v1395_v23, %v1394_v20  ;;  %v1397_v27 = vpop.f32.mrb[2].mxu0  ;;  %v1355_v20 = vcombine.high %v879_v15, %v883_v16 }
  0xf9   :  { %v1418_v26 = vadd.f32 %v1417_v24, %v1416_v21  ;;  %v1419_v28 = vpop.f32.mrb[2].mxu1  ;;  %v1398_v29 = vpop.f32.mrb[3].mxu0  ;;  %v884_v21 = vld [vmem:[%s2016_s8 + $0x38] sm:$0xff]  ;;  %v1348_v24 = vld [vmem:[%s2015_s7] ss:$0 sm:$0xff]  ;;  %s1629_s7 = smov [#allocation4]  }
  0xfa   :  { %v1420_v30 = vpop.f32.mrb[3].mxu1  ;;  %v610_v31 = vadd.f32 %v1396_v25, %v1279_v22  ;;  %v1356_v22 = vcombine.low %v880_v17, %v884_v21  ;;  %v1357_v23 = vcombine.high %v880_v17, %v884_v21  ;;  %v887_v28 = vld [vmem:[%s2016_s8 + $0x50] sm:$0xff] }
  0xfb   :  { %v891_v30 = vld [vmem:[%s2016_s8 + $0x70] sm:$0xff] }
  0xfc   :  { %v650_v32 = vadd.f32 %v1418_v26, %v610_v31  ;;  %v888_v31 = vld [vmem:[%s2016_s8 + $0x58] sm:$0xff] }
 0x116   :  { %v1438_v33 = vpop.f32.mrb[4].mxu0 }
 0x117   :  { %v1460_v34 = vpop.f32.mrb[4].mxu1  ;;  %v1439_v35 = vpop.f32.mrb[5].mxu0 }
 0x118   :  { %v1440_v36 = vadd.f32 %v1439_v35, %v1438_v33  ;;  %v1461_v37 = vpop.f32.mrb[5].mxu1  ;;  %v1441_v38 = vpop.f32.mrb[6].mxu0 }
 0x119   :  { %v1462_v39 = vadd.f32 %v1461_v37, %v1460_v34  ;;  %v1463_v40 = vpop.f32.mrb[6].mxu1  ;;  %v1442_v41 = vpop.f32.mrb[7].mxu0  ;;  %v1362_v38 = vcombine.low %v887_v28, %v891_v30 }
 0x11a   :  { %v690_v42 = vadd.f32 %v1440_v36, %v650_v32  ;;  %v1464_v43 = vpop.f32.mrb[7].mxu1  ;;  %v892_v32 = vld [vmem:[%s2016_s8 + $0x78] sm:$0xff]  ;;  %v1363_v36 = vcombine.high %v887_v28, %v891_v30  ;;  %s1267_s8 = sshll.u32 %s1629_s7, 4  ;;  %s1268_s8 = int_to_ptr.vmem [resolvable:$true] %s1267_s8 }
 0x11b   :  { %v1365_v37 = vcombine.high %v888_v31, %v892_v32  ;;  %s1576_s24 = scalar_lea.vmem %s1268_s8, 128  ;;  %p1581_p1 = scmp.lt.s32.totalorder %s1268_s8, %s1268_s8 }
 0x11c   :  { %v730_v44 = vadd.f32 %v1462_v39, %v690_v42  ;;  %v1364_v39 = vcombine.low %v888_v31, %v892_v32  ;;  %p1577_p0 = scmp.ne.s32.totalorder %s1268_s8, %s1576_s24  ;;  %p1582_p2 = scmp.lt.s32.totalorder %s1576_s24, %s1576_s24 }
 0x11e   :  { %v735_v45 = vmax.f32 %v730_v44, 0.0  ;;  %p1583_p3 = por %p1582_p2, %p1581_p1 }
 0x120   :  { %v736_v46 = vpack.c.bf16 %v735_v45, %v735_v45  ;;  %p1584_p4 = pnand %p1583_p3, %p1577_p0 }
 0x122   :  { %1476 = vmatmul.mubr.msk.bf16.vlgmr.msra.gmra.mrb[8].mxu0 %vm760_vm1, %v736_v46 }
 0x123   :  { %1019 = vmatpush1.bf16.msra.mxu0 %v1350_v60  ;;  %1050 = vmatprep.mubr.bf16.mxu0 %v1628_v18 }
 0x124   :  { %1020 = vmatprep.subr.bf16.mxu0 %v1359_v10 }
 0x127   :  { %1021 = vmatpush1.bf16.msra.mxu0 %v1358_v12 }
 0x128   :  { %1100 = vmatprep.subr.bf16.mxu0 %v1355_v20 }
 0x1f5   :  { %v798_v50 = vpop.f32.mrb[8].mxu0 }
 0x1f6   :  { %v799_v51 = vadd.f32 %v1344_v49, %v798_v50  ;;  %v1477_v52 = vpop.f32.mrb[9].mxu0 }
 0x1f7   :  { %v801_v53 = vpop.f32.mrb[10].mxu0 }
 0x1f8   :  { %v804_v54 = vmul.f32 0.5, %v799_v51  ;;  %1250 = vst [vmem:[#allocation4] sm:$0xff] %v799_v51  ;;  %v1478_v55 = vpop.f32.mrb[11].mxu0 }
 0x1fa   :  { %v805_v56 = vmul.f32 1.442695, %v804_v54 }
 0x1fc   :  { %1558 = vpow2.f32 %v805_v56 }
 0x206   :  { %v1559_v2 = vpop.eup %1558 }
 0x207   :  { %v812_v3 = vmul.f32 %v1559_v2, %v810_v1 }
 0x209   :  { %814 = vrot.lane.b32.xlu0 %v812_v3, %s1627_s23 }
 0x27b   :  { %v815_v4 = vpop.permute.xlu0 %814 }
 0x27c   :  { %v817_v5 = vadd.f32 %v815_v4, %v799_v51 }
 0x27e   :  { %v818_v6 = vpack.c.bf16 %v817_v5, %v817_v5 }
 0x280   :  { %1482 = vmatmul.mubr.msk.bf16.vlgmr.msra.gmra.mrb[8].mxu1 %vm827_vm3, %v818_v6 }
 0x281   :  { %1060 = vmatpush1.bf16.msra.mxu1 %v1352_v63  ;;  %1091 = vmatprep.mubr.bf16.mxu1 %v1628_v18 }
 0x282   :  { %1061 = vmatprep.subr.bf16.mxu1 %v1361_v14 }
 0x285   :  { %1062 = vmatpush1.bf16.msra.mxu1 %v1360_v13 }
 0x286   :  { %1141 = vmatprep.subr.bf16.mxu1 %v1357_v23 }
 0x353   :  { %v869_v25 = vpop.f32.mrb[8].mxu1 }
 0x354   :  { %v870_v26 = vadd.f32 %v1348_v24, %v869_v25  ;;  %v1483_v27 = vpop.f32.mrb[9].mxu1 }
 0x355   :  { %v872_v29 = vpop.f32.mrb[10].mxu1 }
 0x356   :  { %v875_v33 = vmax.f32 %v870_v26, 0.0  ;;  %v1484_v34 = vpop.f32.mrb[11].mxu1 }
 0x358   :  { %v876_v35 = vpack.c.bf16 %v875_v33, %v875_v33 }
 0x35a   :  { %1366 = vmatmul.mubr.msk.bf16.vlgmr.msra.gmra.mrb[12].mxu0 %vm760_vm1, %v876_v35  ;;  %1367 = vmatmul.mubr.msk.bf16.vlgmr.msra.gmra.mrb[12].mxu1 %vm760_vm1, %v876_v35 }
 0x35b   :  { %1101 = vmatpush1.bf16.msra.mxu0 %v1354_v19  ;;  %1142 = vmatpush1.bf16.msra.mxu1 %v1356_v22 }
 0x35c   :  { %1102 = vmatprep.subr.bf16.mxu0 %v1363_v36  ;;  %1143 = vmatprep.subr.bf16.mxu1 %v1365_v37 }
 0x35d   :  { %1132 = vmatprep.mubr.bf16.mxu0 %v1628_v18  ;;  %1173 = vmatprep.mubr.bf16.mxu1 %v1628_v18 }
 0x35f   :  { %1103 = vmatpush1.bf16.msra.mxu0 %v1362_v38  ;;  %1144 = vmatpush1.bf16.msra.mxu1 %v1364_v39 }
 0x362   :  { %1368 = vmatmul.mubr.msk.bf16.vlgmr.msra.gmra.mrb[16].mxu0 %vm760_vm1, %v876_v35  ;;  %1369 = vmatmul.mubr.msk.bf16.vlgmr.msra.gmra.mrb[16].mxu1 %vm760_vm1, %v876_v35 }
 0x363   :  { %1587 = shalt.err (!%p1584_p4)
}
 0x364   :  { %s1588_s27 = scalar_lea.hbm %s2019_s11, 128 }
 0x365   :  { %p1589_p5 = scmp.ne.s32.totalorder %s2019_s11, %s1588_s27  ;;  %p1592_p6 = scmp.lt.u32.totalorder %s1588_s27, %s2019_s11 }
 0x367   :  { %p1594_p7 = pnand %p1592_p6, %p1589_p5 }
 0x369   :  { %1597 = shalt.err (!%p1594_p7)
}
 0x36a   :  { %1270 = dma.vmem_to_hbm [thread:$0]  %s1268_s8, 128, %s2019_s11, [#allocation5]   ;;  %v895_v40 = vlaneseq  ;;  %v893_v44 = vld [vmem:[%s2017_s9] sm:$0xff] }
 0x36b   :  { %s1630_s9 = smov [#allocation2]  }
 0x36c   :  { %v896_v41 = vshrl.u32 %v895_v40, 7  ;;  %s1257_s11 = sshll.u32 %s1630_s9, 4  ;;  %s1258_s11 = int_to_ptr.vmem [resolvable:$true] %s1257_s11 }
 0x36d   :  { %s1598_s15 = scalar_lea.vmem %s1258_s11, 512  ;;  %p1603_p9 = scmp.lt.s32.totalorder %s1258_s11, %s1258_s11 }
 0x36e   :  { %v897_v42 = vsub.s32 0, %v896_v41  ;;  %v905_v43 = vsub.s32 2, %v896_v41  ;;  %v901_v45 = vsub.s32 1, %v896_v41  ;;  %v909_v46 = vsub.s32 3, %v896_v41  ;;  %p1599_p8 = scmp.ne.s32.totalorder %s1258_s11, %s1598_s15  ;;  %p1604_p10 = scmp.lt.s32.totalorder %s1598_s15, %s1598_s15 }
 0x36f   :  { %v913_v57 = vsub.s32 4, %v896_v41  ;;  %v921_v58 = vsub.s32 6, %v896_v41  ;;  %v917_v63 = vsub.s32 5, %v896_v41  ;;  %v925_v0 = vsub.s32 7, %v896_v41 }
 0x370   :  { %v898_v47 = vrot.slane %v893_v44, %v897_v42  ;;  %v906_v48 = vrot.slane %v893_v44, %v905_v43  ;;  %v902_v49 = vrot.slane %v893_v44, %v901_v45  ;;  %v910_v50 = vrot.slane %v893_v44, %v909_v46  ;;  %p1605_p11 = por %p1604_p10, %p1603_p9 }
 0x371   :  { %v914_v7 = vrot.slane %v893_v44, %v913_v57  ;;  %v922_v8 = vrot.slane %v893_v44, %v921_v58  ;;  %v918_v9 = vrot.slane %v893_v44, %v917_v63  ;;  %v926_v10 = vrot.slane %v893_v44, %v925_v0 }
 0x372   :  { %p1606_p12 = pnand %p1605_p11, %p1599_p8 }
 0x42d   :  { %v1052_v51 = vpop.f32.mrb[12].mxu0  ;;  %v1093_v52 = vpop.f32.mrb[12].mxu1 }
 0x42e   :  { %v1053_v53 = vadd.f32 %v1052_v51, %v898_v47  ;;  %v1094_v54 = vadd.f32 %v1093_v52, %v906_v48  ;;  %v1054_v55 = vpop.f32.mrb[13].mxu0  ;;  %v1095_v56 = vpop.f32.mrb[13].mxu1 }
 0x42f   :  { %v1055_v59 = vadd.f32 %v1054_v55, %v902_v49  ;;  %v1096_v60 = vadd.f32 %v1095_v56, %v910_v50  ;;  %v1056_v61 = vpop.f32.mrb[14].mxu0  ;;  %v1097_v62 = vpop.f32.mrb[14].mxu1 }
 0x430   :  { %v1182_v1 = vmul.f32 0.5, %v1053_v53  ;;  %v1184_v2 = vmul.f32 0.5, %v1094_v54  ;;  %v1057_v3 = vpop.f32.mrb[15].mxu0  ;;  %v1098_v4 = vpop.f32.mrb[15].mxu1 }
 0x431   :  { %v1183_v5 = vmul.f32 0.5, %v1055_v59  ;;  %v1185_v6 = vmul.f32 0.5, %v1096_v60 }
 0x432   :  { %1560 = vtanh.f32 %v1182_v1 }
 0x433   :  { %1562 = vtanh.f32 %v1184_v2 }
 0x434   :  { %1564 = vtanh.f32 %v1183_v5 }
 0x435   :  { %1566 = vtanh.f32 %v1185_v6  ;;  %v1134_v11 = vpop.f32.mrb[16].mxu0  ;;  %v1175_v12 = vpop.f32.mrb[16].mxu1 }
 0x436   :  { %v1135_v13 = vadd.f32 %v1134_v11, %v914_v7  ;;  %v1176_v14 = vadd.f32 %v1175_v12, %v922_v8  ;;  %v1136_v15 = vpop.f32.mrb[17].mxu0  ;;  %v1177_v16 = vpop.f32.mrb[17].mxu1 }
 0x437   :  { %v1137_v17 = vadd.f32 %v1136_v15, %v918_v9  ;;  %v1178_v18 = vadd.f32 %v1177_v16, %v926_v10  ;;  %v1138_v19 = vpop.f32.mrb[18].mxu0  ;;  %v1179_v20 = vpop.f32.mrb[18].mxu1 }
 0x438   :  { %v1186_v21 = vmul.f32 0.5, %v1135_v13  ;;  %v1188_v22 = vmul.f32 0.5, %v1176_v14  ;;  %v1139_v23 = vpop.f32.mrb[19].mxu0  ;;  %v1180_v24 = vpop.f32.mrb[19].mxu1 }
 0x439   :  { %v1187_v25 = vmul.f32 0.5, %v1137_v17  ;;  %v1189_v26 = vmul.f32 0.5, %v1178_v18 }
 0x43a   :  { %1568 = vtanh.f32 %v1186_v21 }
 0x43b   :  { %1570 = vtanh.f32 %v1188_v22 }
 0x43c   :  { %v1561_v27 = vpop.eup %1560  ;;  %1572 = vtanh.f32 %v1187_v25 }
 0x43d   :  { %v1563_v28 = vpop.eup %1562  ;;  %v1198_v29 = vmul.f32 0.5, %v1561_v27  ;;  %1574 = vtanh.f32 %v1189_v26 }
 0x43e   :  { %v1565_v30 = vpop.eup %1564  ;;  %v1200_v31 = vmul.f32 0.5, %v1563_v28 }
 0x43f   :  { %v1567_v32 = vpop.eup %1566  ;;  %v1206_v33 = vadd.f32 0.5, %v1198_v29  ;;  %v1199_v34 = vmul.f32 0.5, %v1565_v30 }
 0x440   :  { %v1208_v35 = vadd.f32 0.5, %v1200_v31  ;;  %v1201_v36 = vmul.f32 0.5, %v1567_v32 }
 0x441   :  { %v1207_v37 = vadd.f32 0.5, %v1199_v34 }
 0x442   :  { %v1209_v38 = vadd.f32 0.5, %v1201_v36 }
 0x443   :  { %v1374_v39 = vpack.c.bf16 %v1207_v37, %v1206_v33 }
 0x444   :  { %v1569_v40 = vpop.eup %1568  ;;  %v1375_v41 = vpack.c.bf16 %v1209_v38, %v1208_v35 }
 0x445   :  { %v1571_v42 = vpop.eup %1570  ;;  %v1202_v43 = vmul.f32 0.5, %v1569_v40  ;;  %1246 = vst [vmem:[#allocation2] sm:$0xff] %v1374_v39 }
 0x446   :  { %v1573_v44 = vpop.eup %1572  ;;  %v1204_v45 = vmul.f32 0.5, %v1571_v42  ;;  %1247 = vst [vmem:[#allocation2 + $0x8] sm:$0xff] %v1375_v41 }
 0x447   :  { %v1575_v46 = vpop.eup %1574  ;;  %v1210_v47 = vadd.f32 0.5, %v1202_v43  ;;  %v1203_v48 = vmul.f32 0.5, %v1573_v44 }
 0x448   :  { %v1212_v49 = vadd.f32 0.5, %v1204_v45  ;;  %v1205_v50 = vmul.f32 0.5, %v1575_v46 }
 0x449   :  { %v1211_v51 = vadd.f32 0.5, %v1203_v48 }
 0x44a   :  { %v1213_v52 = vadd.f32 0.5, %v1205_v50 }
 0x44b   :  { %v1376_v53 = vpack.c.bf16 %v1211_v51, %v1210_v47 }
 0x44c   :  { %v1377_v54 = vpack.c.bf16 %v1213_v52, %v1212_v49 }
 0x44d   :  { %1248 = vst [vmem:[#allocation2 + $0x10] sm:$0xff] %v1376_v53 }
 0x44e   :  { %1249 = vst [vmem:[#allocation2 + $0x18] sm:$0xff] %v1377_v54 }
 0x44f   :  { %1609 = shalt.err (!%p1606_p12)
}
 0x450   :  { %s1610_s4 = scalar_lea.hbm %s2018_s10, 512 }
 0x451   :  { %p1611_p13 = scmp.ne.s32.totalorder %s2018_s10, %s1610_s4  ;;  %p1614_p0 = scmp.lt.u32.totalorder %s1610_s4, %s2018_s10 }
 0x453   :  { %p1616_p1 = pnand %p1614_p0, %p1611_p13 }
 0x455   :  { %1619 = shalt.err (!%p1616_p1)
}
 0x456   :  { %1260 = dma.vmem_to_hbm [thread:$0]  %s1258_s11, 512, %s2018_s10, [#allocation3]  }
 0x457   :  { %1620 = dma.done.wait [#allocation3], 512  }
 0x458   :  { %1621 = vsyncadd [#allocation3], 4294966784 }
 0x459   :  { %1622 = dma.done.wait [#allocation5], 128  }
 0x45a   :  { %1623 = vsyncadd [#allocation5], 4294967168 }
 0x45b   :  { %1277 = vsyncpa [#allocation3], 1 }
 0x45c   :  { %1278 = vsyncpa [#allocation5], 1 }

</bundles_post_ra>
